<compile_context>
chip_gen: v6e
topology: v6e:2x2x1
jax: 0.10.0
libtpu: 0.0.40
codegen_flags: <defaults>
</compile_context>

<pallas_src>
import functools

import jax
import jax.numpy as jnp
from jax.experimental import pallas as pl
from jax.experimental.pallas import tpu as pltpu

_LANES = 128
_SUBLANES = 8
# 4096 x 128 x 4B = 2 MiB per f32 input block (8 MiB double-buffered total).
_MAX_TILE_ROWS = 4096
_VMEM_LIMIT_BYTES = 32 * 1024 * 1024


def _signal_loss_kernel(yp_ref, yt_ref, out_ref, ones_ref, *, y_low, y_high):
    """Partial sums for one (tile_rows, 128) block.

    Grid is (num_cores, blocks_per_core); axis 0 is "parallel" (megacore),
    axis 1 is the sequential streaming / accumulation axis.  out_ref is this
    core's (5, 8, 128) accumulator block, resident in VMEM across axis 1.
    """
    i = pl.program_id(1)

    @pl.when(i == 0)
    def _init():
        out_ref[...] = jnp.zeros_like(out_ref)
        ones_ref[...] = jnp.ones_like(ones_ref)

    yp = yp_ref[...].astype(jnp.float32)
    yt = yt_ref[...].astype(jnp.float32)

    mask = yt > jnp.float32(y_low)
    if y_high is not None:
        mask = mask & (yt < jnp.float32(y_high))

    maskf = mask.astype(jnp.float32)
    err_m = jnp.where(mask, yp - yt, jnp.float32(0.0))
    abs_err = jnp.abs(err_m)

    # Approx reciprocal (EUP slot) + one Newton-Raphson step for ~f32 accuracy.
    # Any inf/nan from masked-out lanes (e.g. yt == 0) never survives the select.
    r = pl.reciprocal(yt, approx=True)
    r = r * (jnp.float32(2.0) - yt * r)
    inv = jnp.where(mask, r, jnp.float32(0.0))
    frac_m = err_m * inv
    absf_m = abs_err * inv

    # Column-sum each stat on the MXU: ones(8, tile_rows) @ x(tile_rows, 128)
    # -> (8, 128) whose 8 sublanes all hold the per-lane column sums (the
    # wrapper reads sublane 0).  Keeps the VALU free for the elementwise work.
    ones = ones_ref[...]

    def fold(x):
        return jnp.dot(ones, x, preferred_element_type=jnp.float32)

    out_ref[0] += fold(maskf)
    out_ref[1] += fold(err_m)
    out_ref[2] += fold(abs_err)
    out_ref[3] += fold(frac_m)
    out_ref[4] += fold(absf_m)


def _tail_sums(yp_t, yt_t, y_low, y_high):
    """Plain-JAX partial sums for the (small) remainder not covered by tiles."""
    ypf = yp_t.astype(jnp.float32)
    ytf = yt_t.astype(jnp.float32)
    m = ytf > jnp.float32(y_low)
    if y_high is not None:
        m = m & (ytf < jnp.float32(y_high))
    mf = m.astype(jnp.float32)
    err_m = jnp.where(m, ypf - ytf, 0.0)
    abs_err = jnp.abs(err_m)
    inv = jnp.where(m, 1.0 / ytf, 0.0)
    return jnp.stack([
        jnp.sum(mf),
        jnp.sum(err_m),
        jnp.sum(abs_err),
        jnp.sum(err_m * inv),
        jnp.sum(abs_err * inv),
    ])


def signal_loss(y_pred, y_true, y_low=10, y_high=None,
                max_tile_rows=_MAX_TILE_ROWS):
    """Replicates Signal_Loss.forward.

    Returns (loss, errs_signal, biases_signal, errs_frac_signal,
             biases_frac_signal), all float32 scalars.
    """
    yp = jnp.reshape(y_pred, (-1,))
    yt = jnp.reshape(y_true, (-1,))
    n = yp.shape[0]

    max_tile_rows = max(_SUBLANES, (int(max_tile_rows) // _SUBLANES) * _SUBLANES)
    rows_total = n // _LANES

    # Megacore split: 2 parallel sub-grids when there is enough work; on
    # 1-TC chips the two sub-grids simply run sequentially (same total steps).
    if rows_total >= 2 * _SUBLANES:
        num_cores = 2
    elif rows_total >= _SUBLANES:
        num_cores = 1
    else:
        num_cores = 0

    sums = jnp.zeros((5,), jnp.float32)
    n_main = 0

    if num_cores > 0:
        per_core_rows = rows_total // num_cores
        tile_rows = min(max_tile_rows, (per_core_rows // _SUBLANES) * _SUBLANES)
        blocks_per_core = per_core_rows // tile_rows
        rows_main = num_cores * blocks_per_core * tile_rows
        n_main = rows_main * _LANES

        if n % _LANES == 0:
            # Free reshape; the kernel only touches the first rows_main rows.
            yp2d = yp.reshape(-1, _LANES)
            yt2d = yt.reshape(-1, _LANES)
        else:
            yp2d = yp[:n_main].reshape(-1, _LANES)
            yt2d = yt[:n_main].reshape(-1, _LANES)

        kernel = functools.partial(
            _signal_loss_kernel,
            y_low=float(y_low),
            y_high=None if y_high is None else float(y_high),
        )

        def in_map(c, i):
            return (c * blocks_per_core + i, 0)

        partials = pl.pallas_call(
            kernel,
            out_shape=jax.ShapeDtypeStruct(
                (num_cores, 5, _SUBLANES, _LANES), jnp.float32),
            grid_spec=pltpu.PrefetchScalarGridSpec(
                num_scalar_prefetch=0,
                grid=(num_cores, blocks_per_core),
                in_specs=[
                    pl.BlockSpec((tile_rows, _LANES), in_map),
                    pl.BlockSpec((tile_rows, _LANES), in_map),
                ],
                out_specs=pl.BlockSpec(
                    (None, 5, _SUBLANES, _LANES), lambda c, i: (c, 0, 0, 0)),
                scratch_shapes=[
                    pltpu.VMEM((_SUBLANES, tile_rows), jnp.float32),  # ones
                ],
            ),
            compiler_params=pltpu.CompilerParams(
                dimension_semantics=("parallel", "arbitrary"),
                vmem_limit_bytes=_VMEM_LIMIT_BYTES,
            ),
        )(yp2d, yt2d)

        # All 8 sublanes of each accumulator hold the same column sums; take
        # sublane 0 and reduce over cores and lanes.
        sums = jnp.sum(partials[:, :, 0, :], axis=(0, 2))

    if n_main != n:
        sums = sums + _tail_sums(yp[n_main:], yt[n_main:], y_low, y_high)

    cnt = sums[0]
    # 0/0 -> NaN, matching torch.mean of an empty selection.
    biases_signal = sums[1] / cnt
    errs_signal = sums[2] / cnt
    biases_frac_signal = sums[3] / cnt
    errs_frac_signal = sums[4] / cnt
    loss = errs_signal
    return (loss, errs_signal, biases_signal, errs_frac_signal,
            biases_frac_signal)


def _reference(y_pred, y_true, y_low=10, y_high=None):
    ypf = y_pred.reshape(-1).astype(jnp.float32)
    ytf = y_true.reshape(-1).astype(jnp.float32)
    m = ytf > y_low
    if y_high is not None:
        m = m & (ytf < y_high)
    cnt = jnp.sum(m.astype(jnp.float32))
    err = ypf - ytf
    safe = jnp.where(m, ytf, 1.0)
    bias = jnp.sum(jnp.where(m, err, 0.0)) / cnt
    errm = jnp.sum(jnp.where(m, jnp.abs(err), 0.0)) / cnt
    bfrac = jnp.sum(jnp.where(m, err / safe, 0.0)) / cnt
    efrac = jnp.sum(jnp.where(m, jnp.abs(err / safe), 0.0)) / cnt
    return (errm, errm, bias, efrac, bfrac)


def _check(out, ref):
    for o, r in zip(out, ref):
        assert jnp.allclose(o, r, rtol=1e-5, atol=1e-6), (o, r)


if __name__ == "__main__":
    key = jax.random.PRNGKey(0)

    # Case 1: standard small 4-D input (2048 elems) — grid (2, 1), full coverage.
    k1, k2, key = jax.random.split(key, 3)
    shape = (2, 4, 16, 16)
    y_true = jax.random.uniform(k1, shape, jnp.float32, minval=0.0, maxval=20.0)
    y_pred = y_true + jax.random.normal(k2, shape, jnp.float32)
    out = jax.block_until_ready(signal_loss(y_pred, y_true, y_low=10))
    _check(out, _reference(y_pred, y_true, y_low=10))

    # Case 2: ragged size + y_high bound, small tiles — grid (2, 2) exercises
    # multi-step per-core accumulation plus the plain-JAX tail path.
    k3, k4, key = jax.random.split(key, 3)
    n2 = 80 * 128 + 50
    y_true2 = jax.random.uniform(k3, (n2,), jnp.float32, minval=0.0, maxval=25.0)
    y_pred2 = y_true2 + jax.random.normal(k4, (n2,), jnp.float32)
    out2 = jax.block_until_ready(
        signal_loss(y_pred2, y_true2, y_low=10, y_high=18, max_tile_rows=16))
    _check(out2, _reference(y_pred2, y_true2, y_low=10, y_high=18))

    # Case 3: tiny input (pure tail path, no kernel launch).
    k5, k6, key = jax.random.split(key, 3)
    y_true3 = jax.random.uniform(k5, (7, 13), jnp.float32, minval=0.0, maxval=20.0)
    y_pred3 = y_true3 + jax.random.normal(k6, (7, 13), jnp.float32)
    out3 = jax.block_until_ready(signal_loss(y_pred3, y_true3, y_low=10))
    _check(out3, _reference(y_pred3, y_true3, y_low=10))

    # Case 4: moderate input with default tiling — grid (2, 1), 2048-row tiles,
    # exercises the MXU fold and approx-reciprocal at realistic tile size.
    k7, k8, key = jax.random.split(key, 3)
    shape4 = (2, 4, 256, 256)
    y_true4 = jax.random.uniform(k7, shape4, jnp.float32, minval=0.0, maxval=20.0)
    y_pred4 = y_true4 + jax.random.normal(k8, shape4, jnp.float32)
    out4 = jax.block_until_ready(signal_loss(y_pred4, y_true4, y_low=10))
    _check(out4, _reference(y_pred4, y_true4, y_low=10))

    print("KERNEL_OK")
</pallas_src>

<mosaic_0001>
module attributes {stable_mosaic.version = 11 : i64} {
  func.func @_signal_loss_kernel(%arg0: i32, %arg1: i32, %arg2: memref<8x128xf32, #tpu.memory_space<vmem>>, %arg3: memref<8x128xf32, #tpu.memory_space<vmem>>, %arg4: memref<1x5x8x128xf32, #tpu.memory_space<vmem>>, %arg5: memref<8x8xf32, #tpu.memory_space<vmem>>) attributes {dimension_semantics = [#tpu.dimension_semantics<parallel>, #tpu.dimension_semantics<arbitrary>], iteration_bounds = array<i64: 2, 1>, scalar_prefetch = 0 : i64, scratch_operands = 1 : i64, tpu.core_type = #tpu.core_type<tc>, window_params = [{transform_indices = @transform_0, window_bounds = array<i64: 8, 128>}, {transform_indices = @transform_1, window_bounds = array<i64: 8, 128>}, {transform_indices = @transform_2, window_bounds = array<i64: 1, 5, 8, 128>}]} {
    %c0_i32 = arith.constant 0 : i32
    %0 = arith.cmpi eq, %arg1, %c0_i32 : i32
    %1 = arith.extui %0 : i1 to i32
    %c0_i32_0 = arith.constant 0 : i32
    %2 = arith.cmpi ne, %1, %c0_i32_0 : i32
    scf.if %2 {
      %cst_50 = arith.constant 0.000000e+00 : f32
      %58 = vector.broadcast %cst_50 : f32 to vector<5x8x128xf32>
      %c0_51 = arith.constant 0 : index
      %c0_52 = arith.constant 0 : index
      %c0_53 = arith.constant 0 : index
      %c0_54 = arith.constant 0 : index
      %59 = vector.load %arg4[%c0_51, %c0_52, %c0_53, %c0_54] : memref<1x5x8x128xf32, #tpu.memory_space<vmem>>, vector<1x5x8x128xf32>
      %60 = vector.shape_cast %59 : vector<1x5x8x128xf32> to vector<5x8x128xf32>
      %61 = vector.shape_cast %58 : vector<5x8x128xf32> to vector<1x5x8x128xf32>
      tpu.vector_store %arg4[%c0_51, %c0_52, %c0_53, %c0_54], %61 {strides = array<i32>} : memref<1x5x8x128xf32, #tpu.memory_space<vmem>>, vector<1x5x8x128xf32>,
      %cst_55 = arith.constant 1.000000e+00 : f32
      %62 = vector.broadcast %cst_55 : f32 to vector<8x8xf32>
      %c0_56 = arith.constant 0 : index
      %c0_57 = arith.constant 0 : index
      %63 = vector.load %arg5[%c0_56, %c0_57] : memref<8x8xf32, #tpu.memory_space<vmem>>, vector<8x8xf32>
      tpu.vector_store %arg5[%c0_56, %c0_57], %62 {strides = array<i32>} : memref<8x8xf32, #tpu.memory_space<vmem>>, vector<8x8xf32>,
    } else {
    }
    %c0 = arith.constant 0 : index
    %c0_1 = arith.constant 0 : index
    %3 = vector.load %arg2[%c0, %c0_1] : memref<8x128xf32, #tpu.memory_space<vmem>>, vector<8x128xf32>
    %c0_2 = arith.constant 0 : index
    %c0_3 = arith.constant 0 : index
    %4 = vector.load %arg3[%c0_2, %c0_3] : memref<8x128xf32, #tpu.memory_space<vmem>>, vector<8x128xf32>
    %cst = arith.constant 1.000000e+01 : f32
    %5 = vector.broadcast %cst : f32 to vector<8x128xf32>
    %6 = arith.cmpf ogt, %4, %5 : vector<8x128xf32>
    %7 = arith.extui %6 : vector<8x128xi1> to vector<8x128xi32>
    %8 = arith.sitofp %7 : vector<8x128xi32> to vector<8x128xf32>
    %9 = arith.subf %3, %4 : vector<8x128xf32>
    %cst_4 = arith.constant 0.000000e+00 : f32
    %10 = vector.broadcast %cst_4 : f32 to vector<8x128xf32>
    %11 = arith.select %6, %9, %10 : vector<8x128xi1>, vector<8x128xf32>
    %12 = math.absf %11 : vector<8x128xf32>
    %13 = tpu.reciprocal %4 {approx = true} : vector<8x128xf32> -> vector<8x128xf32>
    %14 = arith.mulf %4, %13 : vector<8x128xf32>
    %cst_5 = arith.constant 2.000000e+00 : f32
    %15 = vector.broadcast %cst_5 : f32 to vector<8x128xf32>
    %16 = arith.subf %15, %14 : vector<8x128xf32>
    %17 = arith.mulf %13, %16 : vector<8x128xf32>
    %cst_6 = arith.constant 0.000000e+00 : f32
    %18 = vector.broadcast %cst_6 : f32 to vector<8x128xf32>
    %19 = arith.select %6, %17, %18 : vector<8x128xi1>, vector<8x128xf32>
    %20 = arith.mulf %11, %19 : vector<8x128xf32>
    %21 = arith.mulf %12, %19 : vector<8x128xf32>
    %c0_7 = arith.constant 0 : index
    %c0_8 = arith.constant 0 : index
    %22 = vector.load %arg5[%c0_7, %c0_8] : memref<8x8xf32, #tpu.memory_space<vmem>>, vector<8x8xf32>
    %c0_9 = arith.constant 0 : index
    %c0_10 = arith.constant 0 : index
    %c0_11 = arith.constant 0 : index
    %c0_12 = arith.constant 0 : index
    %23 = vector.load %arg4[%c0_9, %c0_10, %c0_11, %c0_12] : memref<1x5x8x128xf32, #tpu.memory_space<vmem>>, vector<1x1x8x128xf32>
    %24 = vector.shape_cast %23 : vector<1x1x8x128xf32> to vector<8x128xf32>
    %cst_13 = arith.constant dense<0.000000e+00> : vector<8x128xf32>
    %25 = tpu.matmul %22, %8, %cst_13 {dimension_numbers = #tpu.dot_dimension_numbers<[1], [0], [0], [1], [0, 0, 1, 1], [], []>} : vector<8x8xf32>, vector<8x128xf32>, vector<8x128xf32> -> vector<8x128xf32>
    %26 = arith.addf %24, %25 : vector<8x128xf32>
    %c0_14 = arith.constant 0 : index
    %c0_15 = arith.constant 0 : index
    %c0_16 = arith.constant 0 : index
    %c0_17 = arith.constant 0 : index
    %27 = vector.load %arg4[%c0_14, %c0_15, %c0_16, %c0_17] : memref<1x5x8x128xf32, #tpu.memory_space<vmem>>, vector<1x1x8x128xf32>
    %28 = vector.shape_cast %27 : vector<1x1x8x128xf32> to vector<8x128xf32>
    %29 = vector.shape_cast %26 : vector<8x128xf32> to vector<1x1x8x128xf32>
    tpu.vector_store %arg4[%c0_14, %c0_15, %c0_16, %c0_17], %29 {strides = array<i32>} : memref<1x5x8x128xf32, #tpu.memory_space<vmem>>, vector<1x1x8x128xf32>,
    %c0_18 = arith.constant 0 : index
    %c1 = arith.constant 1 : index
    %c0_19 = arith.constant 0 : index
    %c0_20 = arith.constant 0 : index
    %30 = vector.load %arg4[%c0_18, %c1, %c0_19, %c0_20] : memref<1x5x8x128xf32, #tpu.memory_space<vmem>>, vector<1x1x8x128xf32>
    %31 = vector.shape_cast %30 : vector<1x1x8x128xf32> to vector<8x128xf32>
    %cst_21 = arith.constant dense<0.000000e+00> : vector<8x128xf32>
    %32 = tpu.matmul %22, %11, %cst_21 {dimension_numbers = #tpu.dot_dimension_numbers<[1], [0], [0], [1], [0, 0, 1, 1], [], []>} : vector<8x8xf32>, vector<8x128xf32>, vector<8x128xf32> -> vector<8x128xf32>
    %33 = arith.addf %31, %32 : vector<8x128xf32>
    %c0_22 = arith.constant 0 : index
    %c1_23 = arith.constant 1 : index
    %c0_24 = arith.constant 0 : index
    %c0_25 = arith.constant 0 : index
    %34 = vector.load %arg4[%c0_22, %c1_23, %c0_24, %c0_25] : memref<1x5x8x128xf32, #tpu.memory_space<vmem>>, vector<1x1x8x128xf32>
    %35 = vector.shape_cast %34 : vector<1x1x8x128xf32> to vector<8x128xf32>
    %36 = vector.shape_cast %33 : vector<8x128xf32> to vector<1x1x8x128xf32>
    tpu.vector_store %arg4[%c0_22, %c1_23, %c0_24, %c0_25], %36 {strides = array<i32>} : memref<1x5x8x128xf32, #tpu.memory_space<vmem>>, vector<1x1x8x128xf32>,
    %c0_26 = arith.constant 0 : index
    %c2 = arith.constant 2 : index
    %c0_27 = arith.constant 0 : index
    %c0_28 = arith.constant 0 : index
    %37 = vector.load %arg4[%c0_26, %c2, %c0_27, %c0_28] : memref<1x5x8x128xf32, #tpu.memory_space<vmem>>, vector<1x1x8x128xf32>
    %38 = vector.shape_cast %37 : vector<1x1x8x128xf32> to vector<8x128xf32>
    %cst_29 = arith.constant dense<0.000000e+00> : vector<8x128xf32>
    %39 = tpu.matmul %22, %12, %cst_29 {dimension_numbers = #tpu.dot_dimension_numbers<[1], [0], [0], [1], [0, 0, 1, 1], [], []>} : vector<8x8xf32>, vector<8x128xf32>, vector<8x128xf32> -> vector<8x128xf32>
    %40 = arith.addf %38, %39 : vector<8x128xf32>
    %c0_30 = arith.constant 0 : index
    %c2_31 = arith.constant 2 : index
    %c0_32 = arith.constant 0 : index
    %c0_33 = arith.constant 0 : index
    %41 = vector.load %arg4[%c0_30, %c2_31, %c0_32, %c0_33] : memref<1x5x8x128xf32, #tpu.memory_space<vmem>>, vector<1x1x8x128xf32>
    %42 = vector.shape_cast %41 : vector<1x1x8x128xf32> to vector<8x128xf32>
    %43 = vector.shape_cast %40 : vector<8x128xf32> to vector<1x1x8x128xf32>
    tpu.vector_store %arg4[%c0_30, %c2_31, %c0_32, %c0_33], %43 {strides = array<i32>} : memref<1x5x8x128xf32, #tpu.memory_space<vmem>>, vector<1x1x8x128xf32>,
    %c0_34 = arith.constant 0 : index
    %c3 = arith.constant 3 : index
    %c0_35 = arith.constant 0 : index
    %c0_36 = arith.constant 0 : index
    %44 = vector.load %arg4[%c0_34, %c3, %c0_35, %c0_36] : memref<1x5x8x128xf32, #tpu.memory_space<vmem>>, vector<1x1x8x128xf32>
    %45 = vector.shape_cast %44 : vector<1x1x8x128xf32> to vector<8x128xf32>
    %cst_37 = arith.constant dense<0.000000e+00> : vector<8x128xf32>
    %46 = tpu.matmul %22, %20, %cst_37 {dimension_numbers = #tpu.dot_dimension_numbers<[1], [0], [0], [1], [0, 0, 1, 1], [], []>} : vector<8x8xf32>, vector<8x128xf32>, vector<8x128xf32> -> vector<8x128xf32>
    %47 = arith.addf %45, %46 : vector<8x128xf32>
    %c0_38 = arith.constant 0 : index
    %c3_39 = arith.constant 3 : index
    %c0_40 = arith.constant 0 : index
    %c0_41 = arith.constant 0 : index
    %48 = vector.load %arg4[%c0_38, %c3_39, %c0_40, %c0_41] : memref<1x5x8x128xf32, #tpu.memory_space<vmem>>, vector<1x1x8x128xf32>
    %49 = vector.shape_cast %48 : vector<1x1x8x128xf32> to vector<8x128xf32>
    %50 = vector.shape_cast %47 : vector<8x128xf32> to vector<1x1x8x128xf32>
    tpu.vector_store %arg4[%c0_38, %c3_39, %c0_40, %c0_41], %50 {strides = array<i32>} : memref<1x5x8x128xf32, #tpu.memory_space<vmem>>, vector<1x1x8x128xf32>,
    %c0_42 = arith.constant 0 : index
    %c4 = arith.constant 4 : index
    %c0_43 = arith.constant 0 : index
    %c0_44 = arith.constant 0 : index
    %51 = vector.load %arg4[%c0_42, %c4, %c0_43, %c0_44] : memref<1x5x8x128xf32, #tpu.memory_space<vmem>>, vector<1x1x8x128xf32>
    %52 = vector.shape_cast %51 : vector<1x1x8x128xf32> to vector<8x128xf32>
    %cst_45 = arith.constant dense<0.000000e+00> : vector<8x128xf32>
    %53 = tpu.matmul %22, %21, %cst_45 {dimension_numbers = #tpu.dot_dimension_numbers<[1], [0], [0], [1], [0, 0, 1, 1], [], []>} : vector<8x8xf32>, vector<8x128xf32>, vector<8x128xf32> -> vector<8x128xf32>
    %54 = arith.addf %52, %53 : vector<8x128xf32>
    %c0_46 = arith.constant 0 : index
    %c4_47 = arith.constant 4 : index
    %c0_48 = arith.constant 0 : index
    %c0_49 = arith.constant 0 : index
    %55 = vector.load %arg4[%c0_46, %c4_47, %c0_48, %c0_49] : memref<1x5x8x128xf32, #tpu.memory_space<vmem>>, vector<1x1x8x128xf32>
    %56 = vector.shape_cast %55 : vector<1x1x8x128xf32> to vector<8x128xf32>
    %57 = vector.shape_cast %54 : vector<8x128xf32> to vector<1x1x8x128xf32>
    tpu.vector_store %arg4[%c0_46, %c4_47, %c0_48, %c0_49], %57 {strides = array<i32>} : memref<1x5x8x128xf32, #tpu.memory_space<vmem>>, vector<1x1x8x128xf32>,
    return
  }
  func.func @transform_0(%arg0: i32, %arg1: i32) -> (i32, i32) {
    %c1_i32 = arith.constant 1 : i32
    %0 = arith.muli %arg0, %c1_i32 : i32
    %1 = arith.addi %0, %arg1 : i32
    %c0_i32 = arith.constant 0 : i32
    %c0_i32_0 = arith.constant 0 : i32
    return %1, %c0_i32 : i32, i32
  }
  func.func @transform_1(%arg0: i32, %arg1: i32) -> (i32, i32) {
    %c1_i32 = arith.constant 1 : i32
    %0 = arith.muli %arg0, %c1_i32 : i32
    %1 = arith.addi %0, %arg1 : i32
    %c0_i32 = arith.constant 0 : i32
    %c0_i32_0 = arith.constant 0 : i32
    return %1, %c0_i32 : i32, i32
  }
  func.func @transform_2(%arg0: i32, %arg1: i32) -> (i32, i32, i32, i32) {
    %c0_i32 = arith.constant 0 : i32
    %c0_i32_0 = arith.constant 0 : i32
    %c0_i32_1 = arith.constant 0 : i32
    %c0_i32_2 = arith.constant 0 : i32
    return %arg0, %c0_i32, %c0_i32_0, %c0_i32_1 : i32, i32, i32, i32
  }
}

</mosaic_0001>

<bundles_post_ra>
// kernel: tpu_custom_call.1
= control target key start
LH: loop header
LB: loop body
LE: loop exit
PB: predicated region body
PF: predicated region fallthrough
CT: control target
= control target key end

     0   :  { %7 = vsyncpa [#allocation4], 0  ;;  %s1233_s0 = inlined_call_operand.hbm [shape: f32[16,128], index: 0, kind: input, shape index: {}]   ;;  %s1234_s1 = inlined_call_operand.hbm [shape: f32[16,128], index: 1, kind: input, shape index: {}]   ;;  %s1235_s2 = inlined_call_operand.hbm [shape: f32[2,5,8,128], index: 2, kind: output, shape index: {}]  }
   0x1   :  { %9 = vsyncpa [#allocation4 + $0x1], 0 }
   0x2   :  { %10 = vsyncpa [#allocation7], 0 }
   0x3   :  { %12 = vsyncpa [#allocation7 + $0x1], 0 }
   0x4   :  { %13 = vsyncpa [#allocation5], 0 }
   0x5   :  { %15 = vsyncpa [#allocation5 + $0x1], 0  ;;  %s1042_s9 = smov 0   ;;  %s1044_s10 = smov 0  }
   0x6   :  { %s1046_s11 = smov 0   ;;  %s1048_s12 = smov 0  }
   0x7   :  { %s1050_s13 = smov 0   ;;  %s1052_s14 = smov 0  }
   0x8 LB: > { %s736_s15 = sadd.s32 4294967295, %s1017_s14   ;;  %s737_s16 = sadd.s32 4294967294, %s1017_s14   ;;  %s1017_s14 = sphi %s1052_s14, %s21_s14   ;;  %s1013_s13 = sphi %s1050_s13, %s1247_s13   ;;  %s1009_s12 = sphi %s1048_s12, %s1246_s12   ;;  %s1005_s11 = sphi %s1046_s11, %s1245_s11   ;;  %s1001_s10 = sphi %s1044_s10, %s1244_s10   ;;  %s997_s9 = sphi %s1042_s9, %s1243_s9  }
   0x9   : > { %s33_s17 = sadd.s32 1, %s1013_s13  ;;  %s42_s18 = sadd.s32 1, %s1005_s11 }
   0xa   : > { %p35_p0 = scmp.ge.s32.totalorder %s33_s17, 2  ;;  %p49_p1 = scmp.ne.s32.totalorder %s1005_s11, %s1001_s10 }
   0xb   : > { %p50_p2 = scmp.eq.s32.totalorder %s1017_s14, 0  ;;  %p55_p3 = scmp.ne.s32.totalorder %s1001_s10, %s997_s9 }
   0xc   : > { %s1249_s17 = smov (%p35_p0, %s33_s17), 0  ;;  %p56_p5 = scmp.eq.s32.totalorder %s736_s15, 0 }
   0xd   : > { %p1083_p4 = por %p50_p2, %p49_p1  ;;  %s39_s20 = ssub.s32 %s1013_s13, %s1249_s17 }
   0xe   : > { %p107_p6 = scmp.eq.s32.totalorder %s736_s15, 1  ;;  %p40_p7 = scmp.eq.s32.totalorder %s39_s20, 0 }
   0xf   : > { %p1089_p8 = por %p56_p5, %p55_p3  ;;  %p113_p10 = scmp.eq.s32.totalorder %s737_s16, 1 }
  0x10   : > { %p1093_p9 = por %p107_p6, %p49_p1  ;;  %p820_p13 = scmp.lt.s32.totalorder %s1017_s14, 2 }
  0x11   : > { %s1098_s23 = scalar_select %p40_p7, %s1005_s11, %s42_s18  }
  0x12   : > { %p1100_p11 = por %p113_p10, %p55_p3  ;;  %s1107_s25 = sand.u32 1, %s1005_s11  }
  0x13   : > { %s740_s26 = sshll.u32 %s1107_s25, 3  ;;  %s741_s27 = sshll.u32 %s1013_s13, 7 }
  0x14   : > { %s143_s30 = scalar_lea.hbm %s1233_s0, %s741_s27  ;;  %s137_s3 = scalar_lea.vmem [#allocation3], %s740_s26 }
  0x15   : > { %s145_s4 = sshll.u32 %s137_s3, 4  ;;  %p1116_p0 = pnand %p820_p13, %p1083_p4  ;;  %s146_s4 = int_to_ptr.vmem [resolvable:$true] %s145_s4 }
  0x16   : > { %p744_p1 = scmp.ge.s32.totalorder %s1017_s14, 1  ;;  %p169_p2 = scmp.lt.s32.totalorder %s1017_s14, 3 }
  0x17   : > { %s134_s6 = scalar_lea.sflag [#allocation4], %s1107_s25  ;;  %p879_p3 = pneg %p1116_p0 }
  0x18   : > { %s890_s7 = scalar_lea.vmem %s146_s4, 128  ;;  %s1019_s8 = smov [#allocation3]  }
  0x19   : > { %p891_p5 = scmp.ne.s32.totalorder %s146_s4, %s890_s7  ;;  %s895_s15 = sshll.u32 %s1019_s8, 4  ;;  %s896_s15 = int_to_ptr.vmem [resolvable:$false] %s895_s15 }
  0x1a   : > { %s897_s16 = scalar_lea.vmem %s896_s15, 256  ;;  %p898_p4 = scmp.lt.s32.totalorder %s146_s4, %s896_s15 }
  0x1b   : > { %p893_p6 = pnand %p891_p5, %p879_p3  ;;  %p899_p10 = scmp.lt.s32.totalorder %s897_s16, %s890_s7 }
  0x1d   : > { %p894_p7 = pneg %p893_p6  ;;  %p900_p13 = por %p899_p10, %p898_p4 }
  0x1f   : > { %p901_p12 = pnand %p900_p13, %p894_p7 }
  0x21   : > { %904 = shalt.err (!%p901_p12)
}
  0x22   : > { %812 = dma.hbm_to_vmem [thread:$0]  (!%p1116_p0), %s143_s30, 128, %s146_s4, %s134_s6  }
  0x23   : > { %p1134_p5 = pnand %p744_p1, %p169_p2  ;;  %s162_s28 = scalar_lea.hbm %s1234_s1, %s741_s27 }
  0x24   : > { %s156_s29 = scalar_lea.vmem [#allocation6], %s740_s26  ;;  %s153_s7 = scalar_lea.sflag [#allocation7], %s1107_s25 }
  0x25   : > { %s164_s3 = sshll.u32 %s156_s29, 4  ;;  %s1020_s30 = smov [#allocation6]   ;;  %s165_s3 = int_to_ptr.vmem [resolvable:$true] %s164_s3 }
  0x26   : > { %s918_s8 = scalar_lea.vmem %s165_s3, 128  ;;  %s923_s4 = sshll.u32 %s1020_s30, 4  ;;  %s924_s4 = int_to_ptr.vmem [resolvable:$false] %s923_s4 }
  0x27   : > { %p919_p12 = scmp.ne.s32.totalorder %s165_s3, %s918_s8  ;;  %s925_s6 = scalar_lea.vmem %s924_s4, 256 }
  0x28   : > { %p926_p1 = scmp.lt.s32.totalorder %s165_s3, %s924_s4  ;;  %p927_p2 = scmp.lt.s32.totalorder %s925_s6, %s918_s8 }
  0x29   : > { %p921_p6 = pnand %p919_p12, %p879_p3 }
  0x2a   : > { %p928_p4 = por %p927_p2, %p926_p1 }
  0x2b   : > { %p922_p7 = pneg %p921_p6 }
  0x2d   : > { %p929_p10 = pnand %p928_p4, %p922_p7 }
  0x2f   : > { %932 = shalt.err (!%p929_p10)
}
  0x30   : > { %815 = dma.hbm_to_vmem [thread:$0]  (!%p1116_p0), %s162_s28, 128, %s165_s3, %s153_s7  }
  0x31   : > { %173 = sbr.rel (%p1134_p5) target bundleno = 291 (0x123), region = 28  ;;  %s1150_s25 = sand.u32 (!%p1134_p5), 1, %s1001_s10  }
  0x32   : > { %s745_s26 = sshll.u32 (!%p1134_p5), %s1150_s25, 3  ;;  %s176_s27 = scalar_lea.sflag (!%p1134_p5), [#allocation4], %s1150_s25 }
  0x33   : > { %s179_s15 = scalar_lea.vmem (!%p1134_p5), [#allocation3], %s745_s26 }
  0x36   : > { %984 = dma.done.wait (%p1089_p8), %s176_s27, 128  }
  0x37   : > { %986 = vsyncadd (%p1089_p8), %s176_s27, 4294967168  ;;  %s185_s5 = scalar_lea.sflag [#allocation7], %s1150_s25  ;;  %s188_s16 = scalar_lea.vmem [#allocation6], %s745_s26 }
  0x38   : > { %988 = dma.done.wait (%p1089_p8), %s185_s5, 128  }
  0x39   : > { %990 = vsyncadd (%p1089_p8), %s185_s5, 4294967168  ;;  %vm225_vm0 = vcmask 64512   ;;  %v1021_v0 = vmov 0.0   ;;  %v1022_v1 = vmov 1.0   ;;  %vm1023_vm1 = vmmov 0   ;;  %v227_v2 = vld [vmem:[%s179_s15] sm:$0xff] }
  0x3a   : > { %776 = vmatprep.subr.mxu0 %v1021_v0  ;;  %226 = vst.msk [vmem:[#allocation2] sm:$0xff] %vm225_vm0, %v1022_v1  ;;  %778 = vmatprep.mubr.msk.f32.mxu0 %vm1023_vm1, %v1021_v0  ;;  %v228_v3 = vld [vmem:[%s188_s16] sm:$0xff]  ;;  %s801_s21 = smul.u32 40, %s1150_s25  ;;  %s617_s7 = scalar_lea.sflag [#allocation5], %s1150_s25 }
  0x3b   : > { %781 = vmatprep.subr.mxu1 %v1021_v0  ;;  %783 = vmatprep.mubr.msk.f32.mxu1 %vm1023_vm1, %v1021_v0  ;;  %vm229_vm2 = vcmp.gt.f32.partialorder %v228_v3, 10.0  ;;  %v232_v4 = vsub.f32 %v227_v2, %v228_v3  ;;  %875 = vrcp.f32 %v228_v3  ;;  %s802_s19 = smul.u32 640, %s1009_s12  ;;  %s1024_s12 = smov [#allocation8]  }
  0x3c   : > { %777 = vmatpush3.msk.msra.mxu0 %vm229_vm2, %v1022_v1  ;;  %s213_s18 = scalar_lea.vmem [#allocation8], %s801_s21  ;;  %s937_s30 = sshll.u32 %s1024_s12, 4  ;;  %s938_s30 = int_to_ptr.vmem [resolvable:$false] %s937_s30 }
  0x3d   : > { %v233_v6 = vsel %vm229_vm2, %v232_v4, 0.0  ;;  %786 = vmatprep.subr.mxu0 %v1021_v0  ;;  %782 = vmatpush3.msk.msra.mxu1 %vm229_vm2, %v232_v4  ;;  %s630_s20 = sshll.u32 %s213_s18, 4  ;;  %s1183_s3 = scalar_lea.hbm %s1235_s2, %s802_s19  ;;  %s1185_s20 = int_to_ptr.vmem [resolvable:$true] %s630_s20 }
  0x3e   : > { %v234_v7 = vand.u32 2147483647, %v233_v6  ;;  %791 = vmatprep.subr.mxu1 %v1021_v0  ;;  %s933_s8 = scalar_lea.vmem %s1185_s20, 640  ;;  %s939_s4 = scalar_lea.vmem %s938_s30, 1280 }
  0x3f   : > { %p934_p8 = scmp.ne.s32.totalorder %s1185_s20, %s933_s8  ;;  %p940_p13 = scmp.lt.s32.totalorder %s1185_s20, %s938_s30 }
  0x40   : > { %p941_p5 = scmp.lt.s32.totalorder %s939_s4, %s933_s8 }
  0x41   : > { %v242_v5 = vld [vmem:[#allocation2] sm:$0xff]  ;;  %p935_p0 = pnand %p934_p8, %p1093_p9 }
  0x42   : > { %779 = vmatmul.mubr.msk.f32.vlgmr.msra.gmra.mxu0 %vm225_vm0, %v242_v5  ;;  %784 = vmatmul.mubr.msk.f32.vlgmr.msra.gmra.mxu1 %vm225_vm0, %v242_v5  ;;  %p942_p12 = por %p941_p5, %p940_p13 }
  0x43   : > { %788 = vmatprep.mubr.msk.f32.mxu0 %vm1023_vm1, %v1021_v0  ;;  %787 = vmatpush3.msra.mxu0 %v234_v7  ;;  %p936_p3 = pneg %p935_p0 }
  0x44   : > { %793 = vmatprep.mubr.msk.f32.mxu1 %vm1023_vm1, %v1021_v0  ;;  %796 = vmatprep.subr.mxu0 %v1021_v0 }
  0x45   : > { %p943_p6 = pnand %p942_p12, %p936_p3 }
  0x46   : > { %789 = vmatmul.mubr.msk.f32.vlgmr.msra.gmra.mxu0 %vm225_vm0, %v242_v5 }
  0x47   : > { %798 = vmatprep.mubr.msk.f32.mxu0 %vm1023_vm1, %v1021_v0 }
  0x48   : > { %v876_v8 = vpop.eup %875 }
  0x49   : > { %v236_v9 = vmul.f32 %v876_v8, %v228_v3 }
  0x4b   : > { %v237_v10 = vsub.f32 2.0, %v236_v9 }
  0x4d   : > { %v238_v11 = vmul.f32 %v876_v8, %v237_v10 }
  0x4f   : > { %v239_v12 = vsel %vm229_vm2, %v238_v11, 0.0 }
  0x50   : > { %v240_v13 = vmul.f32 %v239_v12, %v233_v6  ;;  %v241_v14 = vmul.f32 %v239_v12, %v234_v7 }
  0x52   : > { %792 = vmatpush3.msra.mxu1 %v240_v13  ;;  %797 = vmatpush3.msra.mxu0 %v241_v14 }
  0x53   : > { %794 = vmatmul.mubr.msk.f32.vlgmr.msra.gmra.mxu1 %vm225_vm0, %v242_v5  ;;  %799 = vmatmul.mubr.msk.f32.vlgmr.msra.gmra.mxu0 %vm225_vm0, %v242_v5 }
 0x102   : > { %v314_v15 = vpop.f32.mrf.mxu0  ;;  %v388_v17 = vpop.f32.mrf.mxu1 }
 0x103   : > { %319 = vst [vmem:[%s213_s18] sm:$0xff] %v314_v15  ;;  %753 = vst [vmem:[%s213_s18 + $0x8] sm:$0xff] %v388_v17 }
 0x104   : > { %v780_v16 = vpop.f32.mrf.mxu0  ;;  %v785_v19 = vpop.f32.mrf.mxu1 }
 0x106   : > { %v462_v18 = vpop.f32.mrf.mxu0 }
 0x107   : > { %756 = vst [vmem:[%s213_s18 + $0x10] sm:$0xff] %v462_v18 }
 0x108   : > { %v790_v20 = vpop.f32.mrf.mxu0 }
 0x113   : > { %v536_v21 = vpop.f32.mrf.mxu1  ;;  %v610_v22 = vpop.f32.mrf.mxu0 }
 0x114   : > { %759 = vst [vmem:[%s213_s18 + $0x18] sm:$0xff] %v536_v21  ;;  %762 = vst [vmem:[%s213_s18 + $0x20] sm:$0xff] %v610_v22 }
 0x115   : > { %v795_v23 = vpop.f32.mrf.mxu1  ;;  %v800_v24 = vpop.f32.mrf.mxu0 }
 0x116   : > { %946 = shalt.err (!%p943_p6)
}
 0x117   : > { %s947_s6 = scalar_lea.hbm %s1183_s3, 640  ;;  %s951_s15 = scalar_lea.hbm %s1235_s2, 1280 }
 0x118   : > { %p948_p7 = scmp.ne.s32.totalorder %s1183_s3, %s947_s6  ;;  %p952_p4 = scmp.lt.s32.totalorder %s1183_s3, %s1235_s2 }
 0x119   : > { %p953_p10 = scmp.lt.s32.totalorder %s951_s15, %s947_s6 }
 0x11a   : > { %p949_p1 = pnand %p948_p7, %p1093_p9 }
 0x11b   : > { %p954_p8 = por %p953_p10, %p952_p4 }
 0x11c   : > { %p950_p2 = pneg %p949_p1 }
 0x11e   : > { %p955_p0 = pnand %p954_p8, %p950_p2 }
 0x120   : > { %958 = shalt.err (!%p955_p0)
}
 0x121   : > { %s1025_s21 = smov 128   ;;  %s1026_s18 = smov 8  }
 0x122   : > { %807 = dma.vmem_to_hbm [thread:$0]  (%p1093_p9), %s1185_s20, 640, %s1183_s3, %s617_s7, %s1025_s21, %s1025_s21, %s1026_s18  }
 0x123 PF: > { %s645_s19 = sand.u32 1, %s997_s9   ;;  %p1242_p3 = scmp.ge.s32.totalorder %s1017_s14, 2 }
 0x124   : > { %s646_s28 = scalar_lea.sflag [#allocation5], %s645_s19 }
 0x125   : > { %p817_p13 = pnand %p1242_p3, %p1100_p11 }
 0x127   : > { %p818_p5 = pneg %p817_p13 }
 0x129   : > { %992 = dma.done.wait (%p818_p5), %s646_s28, 640  }
 0x12a   : > { %994 = vsyncadd (%p818_p5), %s646_s28, 4294966656  ;;  %s21_s14 = sadd.s32 1, %s1017_s14   ;;  %s1243_s9 = smov %s1001_s10 }
 0x12b   : > { %p18_p12 = scmp.ge.s32.totalorder %s21_s14, 4   ;;  %s1244_s10 = smov %s1005_s11 }
 0x12c   : > { %s1245_s11 = smov %s1098_s23  ;;  %s1246_s12 = smov %s1013_s13 }
 0x12d   : > { %s1247_s13 = smov %s1249_s17  ;;  %20 = sbr.rel (!%p18_p12) target bundleno = 8 (0x8), region = 94 }
 0x132   :  { %651 = vsyncpa [#allocation4], 1 }
 0x133   :  { %653 = vsyncpa [#allocation4 + $0x1], 1 }
 0x134   :  { %654 = vsyncpa [#allocation7], 1 }
 0x135   :  { %656 = vsyncpa [#allocation7 + $0x1], 1 }
 0x136   :  { %657 = vsyncpa [#allocation5], 1 }
 0x137   :  { %659 = vsyncpa [#allocation5 + $0x1], 1 }

</bundles_post_ra>
